<compile_context>
chip_gen: v5e
topology: v5e:2x2
jax: 0.10.0
libtpu: 0.0.40
codegen_flags: <defaults>
</compile_context>

<pallas_src>
import jax
import jax.numpy as jnp
from jax.experimental import pallas as pl
from jax.experimental.pallas import tpu as pltpu


def _daggae_kernel(x_ref, opk_ref,
                   ew1_ref, eb1_ref, ew2_ref, eb2_ref,
                   dw1_ref, db1_ref, dw2_ref, db2_ref,
                   xx_ref, z_ref):
    """One batch-tile (TB samples) per grid step.

    x_ref:   (TB*L, n_in)      row slab of TB samples
    opk_ref: (TB*L, TB*L)      kron(I_TB, A^T with zero diagonal)
    e*/d*:   encoder / decoder weights (full), biases as (1, n) rows
    xx_ref:  (TB*L, n_out_dec)   z_ref: (TB*L, n_out_enc)
    """
    f32 = jnp.float32
    x = x_ref[...]                                                  # (TB*L, n_in)

    # ---- encoder: relu(x @ W1 + b1) @ W2 + b2 (dropout = identity, eval) ---
    h = jnp.dot(x, ew1_ref[...], preferred_element_type=f32) + eb1_ref[...]
    h = jnp.maximum(h, 0.0)
    z = jnp.dot(h, ew2_ref[...], preferred_element_type=f32) + eb2_ref[...]

    # ---- graph mixing: block-diagonal op covers all TB samples in one dot --
    mixed = jnp.dot(opk_ref[...], z, preferred_element_type=f32)    # (TB*L, n_out)

    # ---- decoder -----------------------------------------------------------
    h2 = jnp.dot(mixed, dw1_ref[...], preferred_element_type=f32) + db1_ref[...]
    h2 = jnp.maximum(h2, 0.0)
    xx = jnp.dot(h2, dw2_ref[...], preferred_element_type=f32) + db2_ref[...]

    z_ref[...] = z.astype(z_ref.dtype)
    xx_ref[...] = xx.astype(xx_ref.dtype)


def _pick_block_batch(B, L, max_rows=512):
    """Largest divisor TB of B with TB*L <= max_rows, preferring >=2 grid steps."""
    divs = [t for t in range(1, B + 1) if B % t == 0 and t * L <= max_rows]
    if not divs:
        return 1
    multi = [t for t in divs if B // t >= 2]   # keep >=2 steps for v7x megacore
    return max(multi) if multi else max(divs)


def daggae_forward(x, a, enc_params, dec_params):
    """DAGGAE forward.  x: (B, L, n_in); a: (L, L).  Returns (xx, z, a)."""
    B, L, n_in = x.shape
    f32 = jnp.float32
    xc = x.astype(f32)
    ew1, eb1, ew2, eb2 = [p.astype(f32) for p in enc_params]
    dw1, db1, dw2, db2 = [p.astype(f32) for p in dec_params]
    n_hid_e, n_out_e = ew1.shape[1], ew2.shape[1]
    n_hid_d, n_out_d = dw1.shape[1], dw2.shape[1]
    assert a.shape == (L, L)
    assert dw1.shape[0] == n_out_e, "decoder input dim must equal encoder output dim"

    TB = _pick_block_batch(B, L)
    num_blocks = B // TB
    rows = TB * L

    # Hoisted parameter prep (tiny XLA ops, done once per call):
    #   op  = A^T with zeroed diagonal          (GraphMatrix.op())
    #   opk = kron(I_TB, op)  -> block-diagonal operator for a TB-sample slab.
    op = a.T.astype(f32) * (1.0 - jnp.eye(L, dtype=f32))
    opk = jnp.kron(jnp.eye(TB, dtype=f32), op)                 # (TB*L, TB*L)

    x2 = xc.reshape(B * L, n_in)

    const = lambda b: (0, 0)
    row_map = lambda b: (b, 0)

    xx2, z2 = pl.pallas_call(
        _daggae_kernel,
        out_shape=(
            jax.ShapeDtypeStruct((B * L, n_out_d), f32),
            jax.ShapeDtypeStruct((B * L, n_out_e), f32),
        ),
        grid_spec=pltpu.PrefetchScalarGridSpec(
            num_scalar_prefetch=0,
            grid=(num_blocks,),
            in_specs=[
                pl.BlockSpec((rows, n_in), row_map),          # x slab
                pl.BlockSpec((rows, rows), const),            # kron(I, A^T no-diag)
                pl.BlockSpec((n_in, n_hid_e), const),         # enc W1
                pl.BlockSpec((1, n_hid_e), const),            # enc b1
                pl.BlockSpec((n_hid_e, n_out_e), const),      # enc W2
                pl.BlockSpec((1, n_out_e), const),            # enc b2
                pl.BlockSpec((n_out_e, n_hid_d), const),      # dec W1
                pl.BlockSpec((1, n_hid_d), const),            # dec b1
                pl.BlockSpec((n_hid_d, n_out_d), const),      # dec W2
                pl.BlockSpec((1, n_out_d), const),            # dec b2
            ],
            out_specs=[
                pl.BlockSpec((rows, n_out_d), row_map),       # xx slab
                pl.BlockSpec((rows, n_out_e), row_map),       # z slab
            ],
        ),
        compiler_params=pltpu.CompilerParams(
            dimension_semantics=("parallel",),                # megacore over batch tiles
            vmem_limit_bytes=32 * 1024 * 1024,                # safe on v7x's 64 MiB VMEM
        ),
    )(x2, opk,
      ew1, eb1.reshape(1, -1), ew2, eb2.reshape(1, -1),
      dw1, db1.reshape(1, -1), dw2, db2.reshape(1, -1))

    xx = xx2.reshape(B, L, n_out_d)
    z = z2.reshape(B, L, n_out_e)
    return xx, z, a


def daggae_ref(x, a, ew1, eb1, ew2, eb2, dw1, db1, dw2, db2):
    """Pure-JAX reference matching the PyTorch module (eval mode, f32)."""
    def linear_block(v, w1, b1, w2, b2):
        h = jnp.maximum(v @ w1 + b1, 0.0)
        return h @ w2 + b2

    z = linear_block(x, ew1, eb1, ew2, eb2)
    L = a.shape[0]
    op = a.T * (1.0 - jnp.eye(L, dtype=a.dtype))
    xx = jnp.einsum('jl,ilk->ijk', op, z)
    xx = linear_block(xx, dw1, db1, dw2, db2)
    return xx, z, a


if __name__ == "__main__":
    key = jax.random.PRNGKey(0)
    B, L = 16, 16                      # batch, n_nodes -> TB=8, grid=(2,), 128 rows/step
    n_in, n_hid, n_out = 16, 32, 16    # n_out == n_in (encoder/decoder share config)

    ks = jax.random.split(key, 10)
    x = jax.random.normal(ks[0], (B, L, n_in), dtype=jnp.float32)
    # GraphMatrix.A init is N(0, 1e-7); use a larger scale so the graph mixing
    # path is numerically exercised (init scale is irrelevant to the math).
    a = 0.1 * jax.random.normal(ks[1], (L, L), dtype=jnp.float32)

    def linear_init(kw, kb, fan_in, fan_out):
        # xavier-normal-style weights; PyTorch init zeroes the bias, but a small
        # random bias exercises the bias-add path.
        scale = (2.0 / (fan_in + fan_out)) ** 0.5
        w = scale * jax.random.normal(kw, (fan_in, fan_out), dtype=jnp.float32)
        b = 0.1 * jax.random.normal(kb, (fan_out,), dtype=jnp.float32)
        return w, b

    ew1, eb1 = linear_init(ks[2], ks[3], n_in, n_hid)
    ew2, eb2 = linear_init(ks[4], ks[5], n_hid, n_out)
    dw1, db1 = linear_init(ks[6], ks[7], n_out, n_hid)
    dw2, db2 = linear_init(ks[8], ks[9], n_hid, n_out)

    enc = (ew1, eb1, ew2, eb2)
    dec = (dw1, db1, dw2, db2)

    xx, z, a_out = daggae_forward(x, a, enc, dec)
    xx = jax.block_until_ready(xx)
    z = jax.block_until_ready(z)

    xx_ref, z_ref, _ = daggae_ref(x, a, *enc, *dec)

    assert xx.shape == (B, L, n_out) and z.shape == (B, L, n_out)
    assert jnp.allclose(z, z_ref, atol=1e-5, rtol=1e-5), (
        f"z max abs diff {jnp.max(jnp.abs(z - z_ref))}"
    )
    assert jnp.allclose(xx, xx_ref, atol=1e-5, rtol=1e-5), (
        f"xx max abs diff {jnp.max(jnp.abs(xx - xx_ref))}"
    )
    assert jnp.array_equal(a_out, a)

    print("KERNEL_OK")
</pallas_src>

<mosaic_0001>
module attributes {stable_mosaic.version = 11 : i64} {
  func.func @_daggae_kernel(%arg0: i32, %arg1: memref<128x16xf32, #tpu.memory_space<vmem>>, %arg2: memref<128x128xf32, #tpu.memory_space<vmem>>, %arg3: memref<16x32xf32, #tpu.memory_space<vmem>>, %arg4: memref<1x32xf32, #tpu.memory_space<vmem>>, %arg5: memref<32x16xf32, #tpu.memory_space<vmem>>, %arg6: memref<1x16xf32, #tpu.memory_space<vmem>>, %arg7: memref<16x32xf32, #tpu.memory_space<vmem>>, %arg8: memref<1x32xf32, #tpu.memory_space<vmem>>, %arg9: memref<32x16xf32, #tpu.memory_space<vmem>>, %arg10: memref<1x16xf32, #tpu.memory_space<vmem>>, %arg11: memref<128x16xf32, #tpu.memory_space<vmem>>, %arg12: memref<128x16xf32, #tpu.memory_space<vmem>>) attributes {dimension_semantics = [#tpu.dimension_semantics<parallel>], iteration_bounds = array<i64: 2>, scalar_prefetch = 0 : i64, scratch_operands = 0 : i64, tpu.core_type = #tpu.core_type<tc>, window_params = [{transform_indices = @transform_0, window_bounds = array<i64: 128, 16>}, {pipeline_mode = #tpu.pipeline_mode<synchronous>, transform_indices = @transform_1, window_bounds = array<i64: 128, 128>}, {pipeline_mode = #tpu.pipeline_mode<synchronous>, transform_indices = @transform_2, window_bounds = array<i64: 16, 32>}, {pipeline_mode = #tpu.pipeline_mode<synchronous>, transform_indices = @transform_3, window_bounds = array<i64: 1, 32>}, {pipeline_mode = #tpu.pipeline_mode<synchronous>, transform_indices = @transform_4, window_bounds = array<i64: 32, 16>}, {pipeline_mode = #tpu.pipeline_mode<synchronous>, transform_indices = @transform_5, window_bounds = array<i64: 1, 16>}, {pipeline_mode = #tpu.pipeline_mode<synchronous>, transform_indices = @transform_6, window_bounds = array<i64: 16, 32>}, {pipeline_mode = #tpu.pipeline_mode<synchronous>, transform_indices = @transform_7, window_bounds = array<i64: 1, 32>}, {pipeline_mode = #tpu.pipeline_mode<synchronous>, transform_indices = @transform_8, window_bounds = array<i64: 32, 16>}, {pipeline_mode = #tpu.pipeline_mode<synchronous>, transform_indices = @transform_9, window_bounds = array<i64: 1, 16>}, {transform_indices = @transform_10, window_bounds = array<i64: 128, 16>}, {transform_indices = @transform_11, window_bounds = array<i64: 128, 16>}]} {
    %c0 = arith.constant 0 : index
    %c0_0 = arith.constant 0 : index
    %0 = vector.load %arg1[%c0, %c0_0] : memref<128x16xf32, #tpu.memory_space<vmem>>, vector<128x16xf32>
    %c0_1 = arith.constant 0 : index
    %c0_2 = arith.constant 0 : index
    %1 = vector.load %arg3[%c0_1, %c0_2] : memref<16x32xf32, #tpu.memory_space<vmem>>, vector<16x32xf32>
    %cst = arith.constant dense<0.000000e+00> : vector<128x32xf32>
    %2 = tpu.matmul %0, %1, %cst {dimension_numbers = #tpu.dot_dimension_numbers<[1], [0], [0], [1], [0, 0, 1, 1], [], []>} : vector<128x16xf32>, vector<16x32xf32>, vector<128x32xf32> -> vector<128x32xf32>
    %c0_3 = arith.constant 0 : index
    %c0_4 = arith.constant 0 : index
    %3 = vector.load %arg4[%c0_3, %c0_4] : memref<1x32xf32, #tpu.memory_space<vmem>>, vector<1x32xf32>
    %4 = vector.broadcast %3 : vector<1x32xf32> to vector<128x32xf32>
    %5 = arith.addf %2, %4 : vector<128x32xf32>
    %cst_5 = arith.constant 0.000000e+00 : f32
    %6 = vector.broadcast %cst_5 : f32 to vector<128x32xf32>
    %7 = arith.maximumf %5, %6 : vector<128x32xf32>
    %c0_6 = arith.constant 0 : index
    %c0_7 = arith.constant 0 : index
    %8 = vector.load %arg5[%c0_6, %c0_7] : memref<32x16xf32, #tpu.memory_space<vmem>>, vector<32x16xf32>
    %cst_8 = arith.constant dense<0.000000e+00> : vector<128x16xf32>
    %9 = tpu.matmul %7, %8, %cst_8 {dimension_numbers = #tpu.dot_dimension_numbers<[1], [0], [0], [1], [0, 0, 1, 1], [], []>} : vector<128x32xf32>, vector<32x16xf32>, vector<128x16xf32> -> vector<128x16xf32>
    %c0_9 = arith.constant 0 : index
    %c0_10 = arith.constant 0 : index
    %10 = vector.load %arg6[%c0_9, %c0_10] : memref<1x16xf32, #tpu.memory_space<vmem>>, vector<1x16xf32>
    %11 = vector.broadcast %10 : vector<1x16xf32> to vector<128x16xf32>
    %12 = arith.addf %9, %11 : vector<128x16xf32>
    %c0_11 = arith.constant 0 : index
    %c0_12 = arith.constant 0 : index
    %13 = vector.load %arg2[%c0_11, %c0_12] : memref<128x128xf32, #tpu.memory_space<vmem>>, vector<128x128xf32>
    %cst_13 = arith.constant dense<0.000000e+00> : vector<128x16xf32>
    %14 = tpu.matmul %13, %12, %cst_13 {dimension_numbers = #tpu.dot_dimension_numbers<[1], [0], [0], [1], [0, 0, 1, 1], [], []>} : vector<128x128xf32>, vector<128x16xf32>, vector<128x16xf32> -> vector<128x16xf32>
    %c0_14 = arith.constant 0 : index
    %c0_15 = arith.constant 0 : index
    %15 = vector.load %arg7[%c0_14, %c0_15] : memref<16x32xf32, #tpu.memory_space<vmem>>, vector<16x32xf32>
    %cst_16 = arith.constant dense<0.000000e+00> : vector<128x32xf32>
    %16 = tpu.matmul %14, %15, %cst_16 {dimension_numbers = #tpu.dot_dimension_numbers<[1], [0], [0], [1], [0, 0, 1, 1], [], []>} : vector<128x16xf32>, vector<16x32xf32>, vector<128x32xf32> -> vector<128x32xf32>
    %c0_17 = arith.constant 0 : index
    %c0_18 = arith.constant 0 : index
    %17 = vector.load %arg8[%c0_17, %c0_18] : memref<1x32xf32, #tpu.memory_space<vmem>>, vector<1x32xf32>
    %18 = vector.broadcast %17 : vector<1x32xf32> to vector<128x32xf32>
    %19 = arith.addf %16, %18 : vector<128x32xf32>
    %cst_19 = arith.constant 0.000000e+00 : f32
    %20 = vector.broadcast %cst_19 : f32 to vector<128x32xf32>
    %21 = arith.maximumf %19, %20 : vector<128x32xf32>
    %c0_20 = arith.constant 0 : index
    %c0_21 = arith.constant 0 : index
    %22 = vector.load %arg9[%c0_20, %c0_21] : memref<32x16xf32, #tpu.memory_space<vmem>>, vector<32x16xf32>
    %cst_22 = arith.constant dense<0.000000e+00> : vector<128x16xf32>
    %23 = tpu.matmul %21, %22, %cst_22 {dimension_numbers = #tpu.dot_dimension_numbers<[1], [0], [0], [1], [0, 0, 1, 1], [], []>} : vector<128x32xf32>, vector<32x16xf32>, vector<128x16xf32> -> vector<128x16xf32>
    %c0_23 = arith.constant 0 : index
    %c0_24 = arith.constant 0 : index
    %24 = vector.load %arg10[%c0_23, %c0_24] : memref<1x16xf32, #tpu.memory_space<vmem>>, vector<1x16xf32>
    %25 = vector.broadcast %24 : vector<1x16xf32> to vector<128x16xf32>
    %26 = arith.addf %23, %25 : vector<128x16xf32>
    %c0_25 = arith.constant 0 : index
    %c0_26 = arith.constant 0 : index
    %27 = vector.load %arg12[%c0_25, %c0_26] : memref<128x16xf32, #tpu.memory_space<vmem>>, vector<128x16xf32>
    tpu.vector_store %arg12[%c0_25, %c0_26], %12 {strides = array<i32>} : memref<128x16xf32, #tpu.memory_space<vmem>>, vector<128x16xf32>,
    %c0_27 = arith.constant 0 : index
    %c0_28 = arith.constant 0 : index
    %28 = vector.load %arg11[%c0_27, %c0_28] : memref<128x16xf32, #tpu.memory_space<vmem>>, vector<128x16xf32>
    tpu.vector_store %arg11[%c0_27, %c0_28], %26 {strides = array<i32>} : memref<128x16xf32, #tpu.memory_space<vmem>>, vector<128x16xf32>,
    return
  }
  func.func @transform_0(%arg0: i32) -> (i32, i32) {
    %c0_i32 = arith.constant 0 : i32
    %c0_i32_0 = arith.constant 0 : i32
    return %arg0, %c0_i32 : i32, i32
  }
  func.func @transform_1(%arg0: i32) -> (i32, i32) {
    %c0_i32 = arith.constant 0 : i32
    %c0_i32_0 = arith.constant 0 : i32
    %c0_i32_1 = arith.constant 0 : i32
    return %c0_i32, %c0_i32_0 : i32, i32
  }
  func.func @transform_2(%arg0: i32) -> (i32, i32) {
    %c0_i32 = arith.constant 0 : i32
    %c0_i32_0 = arith.constant 0 : i32
    %c0_i32_1 = arith.constant 0 : i32
    return %c0_i32, %c0_i32_0 : i32, i32
  }
  func.func @transform_3(%arg0: i32) -> (i32, i32) {
    %c0_i32 = arith.constant 0 : i32
    %c0_i32_0 = arith.constant 0 : i32
    %c0_i32_1 = arith.constant 0 : i32
    return %c0_i32, %c0_i32_0 : i32, i32
  }
  func.func @transform_4(%arg0: i32) -> (i32, i32) {
    %c0_i32 = arith.constant 0 : i32
    %c0_i32_0 = arith.constant 0 : i32
    %c0_i32_1 = arith.constant 0 : i32
    return %c0_i32, %c0_i32_0 : i32, i32
  }
  func.func @transform_5(%arg0: i32) -> (i32, i32) {
    %c0_i32 = arith.constant 0 : i32
    %c0_i32_0 = arith.constant 0 : i32
    %c0_i32_1 = arith.constant 0 : i32
    return %c0_i32, %c0_i32_0 : i32, i32
  }
  func.func @transform_6(%arg0: i32) -> (i32, i32) {
    %c0_i32 = arith.constant 0 : i32
    %c0_i32_0 = arith.constant 0 : i32
    %c0_i32_1 = arith.constant 0 : i32
    return %c0_i32, %c0_i32_0 : i32, i32
  }
  func.func @transform_7(%arg0: i32) -> (i32, i32) {
    %c0_i32 = arith.constant 0 : i32
    %c0_i32_0 = arith.constant 0 : i32
    %c0_i32_1 = arith.constant 0 : i32
    return %c0_i32, %c0_i32_0 : i32, i32
  }
  func.func @transform_8(%arg0: i32) -> (i32, i32) {
    %c0_i32 = arith.constant 0 : i32
    %c0_i32_0 = arith.constant 0 : i32
    %c0_i32_1 = arith.constant 0 : i32
    return %c0_i32, %c0_i32_0 : i32, i32
  }
  func.func @transform_9(%arg0: i32) -> (i32, i32) {
    %c0_i32 = arith.constant 0 : i32
    %c0_i32_0 = arith.constant 0 : i32
    %c0_i32_1 = arith.constant 0 : i32
    return %c0_i32, %c0_i32_0 : i32, i32
  }
  func.func @transform_10(%arg0: i32) -> (i32, i32) {
    %c0_i32 = arith.constant 0 : i32
    %c0_i32_0 = arith.constant 0 : i32
    return %arg0, %c0_i32 : i32, i32
  }
  func.func @transform_11(%arg0: i32) -> (i32, i32) {
    %c0_i32 = arith.constant 0 : i32
    %c0_i32_0 = arith.constant 0 : i32
    return %arg0, %c0_i32 : i32, i32
  }
}

</mosaic_0001>

<bundles_post_ra>
// kernel: tpu_custom_call.1
= control target key start
LH: loop header
LB: loop body
LE: loop exit
PB: predicated region body
PF: predicated region fallthrough
CT: control target
= control target key end

     0   :  { %s1300_s17 = smov 0   ;;  %s1589_s0 = inlined_call_operand.vmem [shape: f32[256,16], index: 0, kind: input, shape index: {}]   ;;  %s1590_s1 = inlined_call_operand.vmem [shape: f32[128,128], index: 1, kind: input, shape index: {}]   ;;  %s1591_s2 = inlined_call_operand.vmem [shape: f32[16,32], index: 2, kind: input, shape index: {}]   ;;  %s1592_s3 = inlined_call_operand.vmem [shape: f32[1,32], index: 3, kind: input, shape index: {}]   ;;  %s1593_s4 = inlined_call_operand.vmem [shape: f32[32,16], index: 4, kind: input, shape index: {}]   ;;  %s1594_s5 = inlined_call_operand.vmem [shape: f32[1,16], index: 5, kind: input, shape index: {}]   ;;  %s1595_s6 = inlined_call_operand.vmem [shape: f32[16,32], index: 6, kind: input, shape index: {}]   ;;  %s1596_s7 = inlined_call_operand.vmem [shape: f32[1,32], index: 7, kind: input, shape index: {}]   ;;  %s1597_s8 = inlined_call_operand.vmem [shape: f32[32,16], index: 8, kind: input, shape index: {}]   ;;  %s1598_s9 = inlined_call_operand.vmem [shape: f32[1,16], index: 9, kind: input, shape index: {}]   ;;  %s1599_s10 = inlined_call_operand.vmem [shape: f32[256,16], index: 10, kind: output, shape index: {0}]   ;;  %s1600_s11 = inlined_call_operand.vmem [shape: f32[256,16], index: 11, kind: output, shape index: {1}]  }
   0x1 LB: > { %s1137_s18 = sadd.s32 4294967295, %s1238_s17   ;;  %p1141_p0 = scmp.ge.s32.totalorder %s1238_s17, 1  ;;  %s1238_s17 = sphi %s1300_s17, %s22_s17  }
   0x2   : > { %p341_p1 = scmp.lt.s32.totalorder %s1238_s17, 3 }
   0x4   : > { %p342_p2 = pnand %p1141_p0, %p341_p1 }
   0x5   : > { %s1142_s23 = sshll.u32 (!%p342_p2), %s1137_s18, 4 }
   0x6   : > { %345 = sbr.rel (%p342_p2) target bundleno = 942 (0x3ae), region = 60  ;;  %p387_p3 = scmp.lt.s32.totalorder (!%p342_p2), %s1142_s23, 31 }
   0xb   : > { %v421_v0 = vld [vmem:[%s1591_s2 + $0x8] sm:$0xff]  ;;  %v420_v1 = vld [vmem:[%s1591_s2] sm:$0xff]  ;;  %v559_v2 = vld [vmem:[%s1593_s4 + $0x18] sm:$0xff]  ;;  %s1602_s23 = smov (!%p387_p3, %s1142_s23), 31  ;;  %vm426_vm0 = vcmask 130048   ;;  %vm564_vm1 = vcmask 261120  }
   0xc   : > { %489 = vmatpush.msra.mxu0 %v421_v0  ;;  %1214 = vmatpush.msra.mxu1 %v421_v0  ;;  %v558_v3 = vld [vmem:[%s1593_s4 + $0x10] sm:$0xff]  ;;  %s1320_s28 = sshll.u32 %s1602_s23, 3  ;;  %v557_v5 = vld [vmem:[%s1593_s4 + $0x8] sm:$0xff]  ;;  %v556_v8 = vld [vmem:[%s1593_s4] sm:$0xff] }
   0xd   : > { %1215 = vmatpush.msra.mxu2 %v421_v0  ;;  %1216 = vmatpush.msra.mxu3 %v421_v0  ;;  %s1326_s12 = scalar_lea.vmem %s1589_s0, %s1320_s28  ;;  %v1369_v22 = vld [vmem:[%s1592_s3] ss:$0 sm:$0xff]  ;;  %s1410_s24 = scalar_lea.vmem %s1600_s11, %s1320_s28 }
   0xe   : > { %490 = vmatpush.msra.mxu0 %v420_v1  ;;  %1217 = vmatpush.msra.mxu1 %v420_v1  ;;  %v404_v4 = vld [vmem:[%s1326_s12] sm:$0xff]  ;;  %v405_v10 = vld [vmem:[%s1326_s12 + $0x8] sm:$0xff]  ;;  %v406_v14 = vld [vmem:[%s1326_s12 + $0x10] sm:$0xff] }
   0xf   : > { %1218 = vmatpush.msra.mxu2 %v420_v1  ;;  %1219 = vmatpush.msra.mxu3 %v420_v1  ;;  %v408_v6 = vld [vmem:[%s1326_s12 + $0x20] sm:$0xff]  ;;  %v409_v11 = vld [vmem:[%s1326_s12 + $0x28] sm:$0xff]  ;;  %v410_v15 = vld [vmem:[%s1326_s12 + $0x30] sm:$0xff] }
  0x10   : > { %625 = vmatpush.msrb.mxu1 %v559_v2  ;;  %1148 = vmatmul.msk.f32.vlgmr.msra.gmra.mxu0 %vm426_vm0, %v404_v4  ;;  %v412_v7 = vld [vmem:[%s1326_s12 + $0x40] sm:$0xff]  ;;  %v413_v12 = vld [vmem:[%s1326_s12 + $0x48] sm:$0xff]  ;;  %v414_v16 = vld [vmem:[%s1326_s12 + $0x50] sm:$0xff] }
  0x11   : > { %1152 = vmatmul.msk.f32.vlgmr.msra.gmra.mxu1 %vm426_vm0, %v408_v6  ;;  %1156 = vmatmul.msk.f32.vlgmr.msra.gmra.mxu2 %vm426_vm0, %v412_v7  ;;  %v416_v9 = vld [vmem:[%s1326_s12 + $0x60] sm:$0xff]  ;;  %v417_v13 = vld [vmem:[%s1326_s12 + $0x68] sm:$0xff]  ;;  %v418_v17 = vld [vmem:[%s1326_s12 + $0x70] sm:$0xff] }
  0x12   : > { %626 = vmatpush.msrb.mxu1 %v558_v3  ;;  %1160 = vmatmul.msk.f32.vlgmr.msra.gmra.mxu3 %vm426_vm0, %v416_v9  ;;  %v407_v18 = vld [vmem:[%s1326_s12 + $0x18] sm:$0xff]  ;;  %v1229_v7 = vld [vmem:[%s1594_s5] ss:$0 sm:$0xff] }
  0x13   : > { %v411_v19 = vld [vmem:[%s1326_s12 + $0x38] sm:$0xff] }
  0x14   : > { %627 = vmatpush.msrb.mxu1 %v557_v5  ;;  %v415_v20 = vld [vmem:[%s1326_s12 + $0x58] sm:$0xff] }
  0x15   : > { %v419_v21 = vld [vmem:[%s1326_s12 + $0x78] sm:$0xff] }
  0x16   : > { %628 = vmatpush.msrb.mxu1 %v556_v8 }
  0x18   : > { %1149 = vmatmul.msk.f32.gmra.mxu0 %vm426_vm0, %v405_v10 }
  0x19   : > { %1153 = vmatmul.msk.f32.gmra.mxu1 %vm426_vm0, %v409_v11  ;;  %1157 = vmatmul.msk.f32.gmra.mxu2 %vm426_vm0, %v413_v12 }
  0x1a   : > { %1161 = vmatmul.msk.f32.gmra.mxu3 %vm426_vm0, %v417_v13 }
  0x20   : > { %1150 = vmatmul.msk.f32.gmra.mxu0 %vm426_vm0, %v406_v14 }
  0x21   : > { %1154 = vmatmul.msk.f32.gmra.mxu1 %vm426_vm0, %v410_v15  ;;  %1158 = vmatmul.msk.f32.gmra.mxu2 %vm426_vm0, %v414_v16 }
  0x22   : > { %1162 = vmatmul.msk.f32.gmra.mxu3 %vm426_vm0, %v418_v17 }
  0x28   : > { %1151 = vmatmul.msk.f32.gmra.mxu0 %vm426_vm0, %v407_v18 }
  0x29   : > { %1155 = vmatmul.msk.f32.gmra.mxu1 %vm426_vm0, %v411_v19  ;;  %1159 = vmatmul.msk.f32.gmra.mxu2 %vm426_vm0, %v415_v20 }
  0x2a   : > { %1163 = vmatmul.msk.f32.gmra.mxu3 %vm426_vm0, %v419_v21 }
  0x8d   : > { %v492_v23 = vpop.f32.mrf.mxu0 }
  0x8e   : > { %v493_v24 = vadd.f32 %v1369_v22, %v492_v23  ;;  %v504_v32 = vpop.f32.mrf.mxu1 }
  0x8f   : > { %v505_v36 = vadd.f32 %v1369_v22, %v504_v32 }
  0x90   : > { %v540_v25 = vmax.f32 %v493_v24, 0.0 }
  0x91   : > { %v544_v38 = vmax.f32 %v505_v36, 0.0 }
  0x92   : > { %1164 = vmatmul.msk.f32.vlgmr.msrb.gmra.mxu1 %vm564_vm1, %v540_v25 }
  0x94   : > { %v516_v45 = vpop.f32.mrf.mxu2 }
  0x95   : > { %v495_v26 = vpop.f32.mrf.mxu0  ;;  %v517_v48 = vadd.f32 %v1369_v22, %v516_v45  ;;  %v528_v57 = vpop.f32.mrf.mxu3  ;;  %v683_v45 = vld [vmem:[%s1590_s1 + $0x28] sm:$0xff] }
  0x96   : > { %v496_v27 = vadd.f32 %v1369_v22, %v495_v26  ;;  %v507_v37 = vpop.f32.mrf.mxu1  ;;  %v529_v60 = vadd.f32 %v1369_v22, %v528_v57  ;;  %v693_v57 = vld [vmem:[%s1590_s1 + $0x78] sm:$0xff] }
  0x97   : > { %v508_v39 = vadd.f32 %v1369_v22, %v507_v37  ;;  %v548_v50 = vmax.f32 %v517_v48, 0.0  ;;  %v686_v48 = vld [vmem:[%s1590_s1 + $0x40] sm:$0xff] }
  0x98   : > { %v541_v28 = vmax.f32 %v496_v27, 0.0  ;;  %v552_v62 = vmax.f32 %v529_v60, 0.0 }
  0x99   : > { %v545_v41 = vmax.f32 %v508_v39, 0.0 }
  0x9a   : > { %1165 = vmatmul.msk.f32.gmra.mxu1 %vm564_vm1, %v541_v28 }
  0x9c   : > { %v519_v49 = vpop.f32.mrf.mxu2 }
  0x9d   : > { %v498_v29 = vpop.f32.mrf.mxu0  ;;  %v520_v51 = vadd.f32 %v1369_v22, %v519_v49  ;;  %v531_v61 = vpop.f32.mrf.mxu3  ;;  %v760_v49 = vld [vmem:[%s1595_s6 + $0x8] sm:$0xff] }
  0x9e   : > { %v499_v30 = vadd.f32 %v1369_v22, %v498_v29  ;;  %v510_v40 = vpop.f32.mrf.mxu1  ;;  %v532_v63 = vadd.f32 %v1369_v22, %v531_v61  ;;  %827 = vmatpush.msrb.mxu3 %v760_v49 }
  0x9f   : > { %v511_v42 = vadd.f32 %v1369_v22, %v510_v40  ;;  %v549_v53 = vmax.f32 %v520_v51, 0.0  ;;  %v678_v40 = vld [vmem:[%s1590_s1] sm:$0xff]  ;;  %v688_v51 = vld [vmem:[%s1590_s1 + $0x50] sm:$0xff] }
  0xa0   : > { %v542_v31 = vmax.f32 %v499_v30, 0.0  ;;  %v553_v1 = vmax.f32 %v532_v63, 0.0 }
  0xa1   : > { %v546_v43 = vmax.f32 %v511_v42, 0.0  ;;  %v680_v42 = vld [vmem:[%s1590_s1 + $0x10] sm:$0xff] }
  0xa2   : > { %1166 = vmatmul.msk.f32.gmra.mxu1 %vm564_vm1, %v542_v31 }
  0xa4   : > { %v522_v52 = vpop.f32.mrf.mxu2 }
  0xa5   : > { %v501_v33 = vpop.f32.mrf.mxu0  ;;  %v523_v54 = vadd.f32 %v1369_v22, %v522_v52  ;;  %v534_v0 = vpop.f32.mrf.mxu3  ;;  %v759_v52 = vld [vmem:[%s1595_s6] sm:$0xff] }
  0xa6   : > { %v502_v34 = vadd.f32 %v1369_v22, %v501_v33  ;;  %v513_v44 = vpop.f32.mrf.mxu1  ;;  %v535_v2 = vadd.f32 %v1369_v22, %v534_v0  ;;  %828 = vmatpush.msrb.mxu3 %v759_v52 }
  0xa7   : > { %v514_v46 = vadd.f32 %v1369_v22, %v513_v44  ;;  %v550_v55 = vmax.f32 %v523_v54, 0.0  ;;  %v682_v44 = vld [vmem:[%s1590_s1 + $0x20] sm:$0xff] }
  0xa8   : > { %v543_v35 = vmax.f32 %v502_v34, 0.0  ;;  %v554_v3 = vmax.f32 %v535_v2, 0.0  ;;  %v690_v54 = vld [vmem:[%s1590_s1 + $0x60] sm:$0xff] }
  0xa9   : > { %v547_v47 = vmax.f32 %v514_v46, 0.0  ;;  %v684_v46 = vld [vmem:[%s1590_s1 + $0x30] sm:$0xff] }
  0xaa   : > { %1167 = vmatmul.msk.f32.gmra.mxu1 %vm564_vm1, %v543_v35 }
  0xac   : > { %v525_v56 = vpop.f32.mrf.mxu2 }
  0xad   : > { %v526_v58 = vadd.f32 %v1369_v22, %v525_v56  ;;  %v537_v4 = vpop.f32.mrf.mxu3  ;;  %v692_v56 = vld [vmem:[%s1590_s1 + $0x70] sm:$0xff] }
  0xae   : > { %v538_v5 = vadd.f32 %v1369_v22, %v537_v4  ;;  %v897_v4 = vld [vmem:[%s1597_s8 + $0x18] sm:$0xff] }
  0xaf   : > { %v551_v59 = vmax.f32 %v526_v58, 0.0  ;;  %962 = vmatpush.msrb.mxu0 %v897_v4 }
  0xb0   : > { %v555_v6 = vmax.f32 %v538_v5, 0.0 }
  0xb2   : > { %1168 = vmatmul.msk.f32.gmra.mxu1 %vm564_vm1, %v544_v38 }
  0xba   : > { %1169 = vmatmul.msk.f32.gmra.mxu1 %vm564_vm1, %v545_v41  ;;  %v679_v41 = vld [vmem:[%s1590_s1 + $0x8] sm:$0xff] }
  0xc2   : > { %1170 = vmatmul.msk.f32.gmra.mxu1 %vm564_vm1, %v546_v43  ;;  %v681_v43 = vld [vmem:[%s1590_s1 + $0x18] sm:$0xff] }
  0xca   : > { %1171 = vmatmul.msk.f32.gmra.mxu1 %vm564_vm1, %v547_v47  ;;  %v685_v47 = vld [vmem:[%s1590_s1 + $0x38] sm:$0xff] }
  0xd2   : > { %1172 = vmatmul.msk.f32.gmra.mxu1 %vm564_vm1, %v548_v50  ;;  %v687_v50 = vld [vmem:[%s1590_s1 + $0x48] sm:$0xff] }
  0xda   : > { %1173 = vmatmul.msk.f32.gmra.mxu1 %vm564_vm1, %v549_v53  ;;  %v689_v53 = vld [vmem:[%s1590_s1 + $0x58] sm:$0xff] }
  0xe2   : > { %1174 = vmatmul.msk.f32.gmra.mxu1 %vm564_vm1, %v550_v55  ;;  %v691_v55 = vld [vmem:[%s1590_s1 + $0x68] sm:$0xff] }
  0xea   : > { %1175 = vmatmul.msk.f32.gmra.mxu1 %vm564_vm1, %v551_v59 }
  0xf2   : > { %1176 = vmatmul.msk.f32.gmra.mxu1 %vm564_vm1, %v552_v62 }
  0xfa   : > { %1177 = vmatmul.msk.f32.gmra.mxu1 %vm564_vm1, %v553_v1 }
 0x102   : > { %1178 = vmatmul.msk.f32.gmra.mxu1 %vm564_vm1, %v554_v3 }
 0x10a   : > { %1179 = vmatmul.msk.f32.gmra.mxu1 %vm564_vm1, %v555_v6  ;;  %v896_v6 = vld [vmem:[%s1597_s8 + $0x10] sm:$0xff] }
 0x10b   : > { %963 = vmatpush.msrb.mxu0 %v896_v6 }
 0x10f   : > { %v630_v8 = vpop.f32.mrf.mxu1 }
 0x110   : > { %v631_v9 = vadd.f32 %v1229_v7, %v630_v8  ;;  %v895_v8 = vld [vmem:[%s1597_s8 + $0x8] sm:$0xff] }
 0x111   : > { %964 = vmatpush.msrb.mxu0 %v895_v8 }
 0x112   : > { %1015 = vst.msk [vmem:[%s1410_s24] sm:$0xff] %vm426_vm0, %v631_v9 }
 0x117   : > { %v633_v10 = vpop.f32.mrf.mxu1 }
 0x118   : > { %v634_v11 = vadd.f32 %v1229_v7, %v633_v10 }
 0x11a   : > { %1016 = vst.msk [vmem:[%s1410_s24 + $0x8] sm:$0xff] %vm426_vm0, %v634_v11 }
 0x11f   : > { %v636_v12 = vpop.f32.mrf.mxu1 }
 0x120   : > { %v637_v13 = vadd.f32 %v1229_v7, %v636_v12 }
 0x122   : > { %1017 = vst.msk [vmem:[%s1410_s24 + $0x10] sm:$0xff] %vm426_vm0, %v637_v13 }
 0x127   : > { %v639_v14 = vpop.f32.mrf.mxu1 }
 0x128   : > { %v640_v15 = vadd.f32 %v1229_v7, %v639_v14  ;;  %v1230_v14 = vld [vmem:[%s1596_s7] ss:$0 sm:$0xff] }
 0x12a   : > { %1018 = vst.msk [vmem:[%s1410_s24 + $0x18] sm:$0xff] %vm426_vm0, %v640_v15 }
 0x12f   : > { %v642_v16 = vpop.f32.mrf.mxu1 }
 0x130   : > { %v643_v17 = vadd.f32 %v1229_v7, %v642_v16 }
 0x132   : > { %1019 = vst.msk [vmem:[%s1410_s24 + $0x20] sm:$0xff] %vm426_vm0, %v643_v17 }
 0x137   : > { %v645_v18 = vpop.f32.mrf.mxu1 }
 0x138   : > { %v646_v19 = vadd.f32 %v1229_v7, %v645_v18 }
 0x13a   : > { %1020 = vst.msk [vmem:[%s1410_s24 + $0x28] sm:$0xff] %vm426_vm0, %v646_v19 }
 0x13f   : > { %v648_v20 = vpop.f32.mrf.mxu1 }
 0x140   : > { %v649_v21 = vadd.f32 %v1229_v7, %v648_v20 }
 0x142   : > { %1021 = vst.msk [vmem:[%s1410_s24 + $0x30] sm:$0xff] %vm426_vm0, %v649_v21 }
 0x147   : > { %v651_v22 = vpop.f32.mrf.mxu1 }
 0x148   : > { %v652_v23 = vadd.f32 %v1229_v7, %v651_v22 }
 0x14a   : > { %1022 = vst.msk [vmem:[%s1410_s24 + $0x38] sm:$0xff] %vm426_vm0, %v652_v23 }
 0x14f   : > { %v654_v24 = vpop.f32.mrf.mxu1 }
 0x150   : > { %v655_v25 = vadd.f32 %v1229_v7, %v654_v24 }
 0x152   : > { %1023 = vst.msk [vmem:[%s1410_s24 + $0x40] sm:$0xff] %vm426_vm0, %v655_v25 }
 0x157   : > { %v657_v26 = vpop.f32.mrf.mxu1 }
 0x158   : > { %v658_v27 = vadd.f32 %v1229_v7, %v657_v26 }
 0x15a   : > { %1024 = vst.msk [vmem:[%s1410_s24 + $0x48] sm:$0xff] %vm426_vm0, %v658_v27 }
 0x15f   : > { %v660_v28 = vpop.f32.mrf.mxu1 }
 0x160   : > { %v661_v29 = vadd.f32 %v1229_v7, %v660_v28 }
 0x162   : > { %1025 = vst.msk [vmem:[%s1410_s24 + $0x50] sm:$0xff] %vm426_vm0, %v661_v29 }
 0x167   : > { %v663_v30 = vpop.f32.mrf.mxu1 }
 0x168   : > { %v664_v31 = vadd.f32 %v1229_v7, %v663_v30 }
 0x16a   : > { %1026 = vst.msk [vmem:[%s1410_s24 + $0x58] sm:$0xff] %vm426_vm0, %v664_v31 }
 0x16f   : > { %v666_v32 = vpop.f32.mrf.mxu1 }
 0x170   : > { %v667_v33 = vadd.f32 %v1229_v7, %v666_v32 }
 0x172   : > { %1027 = vst.msk [vmem:[%s1410_s24 + $0x60] sm:$0xff] %vm426_vm0, %v667_v33 }
 0x177   : > { %v669_v34 = vpop.f32.mrf.mxu1 }
 0x178   : > { %v670_v35 = vadd.f32 %v1229_v7, %v669_v34 }
 0x17a   : > { %1028 = vst.msk [vmem:[%s1410_s24 + $0x68] sm:$0xff] %vm426_vm0, %v670_v35 }
 0x17f   : > { %v672_v36 = vpop.f32.mrf.mxu1 }
 0x180   : > { %v673_v37 = vadd.f32 %v1229_v7, %v672_v36 }
 0x182   : > { %1029 = vst.msk [vmem:[%s1410_s24 + $0x70] sm:$0xff] %vm426_vm0, %v673_v37 }
 0x187   : > { %v675_v38 = vpop.f32.mrf.mxu1 }
 0x188   : > { %v676_v39 = vadd.f32 %v1229_v7, %v675_v38 }
 0x18a   : > { %1030 = vst.msk [vmem:[%s1410_s24 + $0x78] sm:$0xff] %vm426_vm0, %v676_v39  ;;  %694 = vmatpush.msrb.mxu2 %v676_v39  ;;  %s1552_s24 = scalar_lea.vmem %s1599_s10, %s1320_s28 }
 0x18c   : > { %695 = vmatpush.msrb.mxu2 %v673_v37 }
 0x18e   : > { %696 = vmatpush.msrb.mxu2 %v670_v35 }
 0x190   : > { %697 = vmatpush.msrb.mxu2 %v667_v33 }
 0x192   : > { %698 = vmatpush.msrb.mxu2 %v664_v31 }
 0x194   : > { %699 = vmatpush.msrb.mxu2 %v661_v29 }
 0x196   : > { %700 = vmatpush.msrb.mxu2 %v658_v27 }
 0x198   : > { %701 = vmatpush.msrb.mxu2 %v655_v25 }
 0x19a   : > { %702 = vmatpush.msrb.mxu2 %v652_v23 }
 0x19c   : > { %703 = vmatpush.msrb.mxu2 %v649_v21 }
 0x19e   : > { %704 = vmatpush.msrb.mxu2 %v646_v19 }
 0x1a0   : > { %705 = vmatpush.msrb.mxu2 %v643_v17 }
 0x1a2   : > { %706 = vmatpush.msrb.mxu2 %v640_v15 }
 0x1a4   : > { %707 = vmatpush.msrb.mxu2 %v637_v13 }
 0x1a6   : > { %708 = vmatpush.msrb.mxu2 %v634_v11 }
 0x1a8   : > { %709 = vmatpush.msrb.mxu2 %v631_v9  ;;  %v894_v9 = vld [vmem:[%s1597_s8] sm:$0xff] }
 0x1a9   : > { %710 = vmatmul.f32.vlgmr.msrb.gmra.mxu2 %v678_v40  ;;  %965 = vmatpush.msrb.mxu0 %v894_v9 }
 0x1b1   : > { %713 = vmatmul.f32.gmra.mxu2 %v679_v41 }
 0x1b9   : > { %716 = vmatmul.f32.gmra.mxu2 %v680_v42 }
 0x1c1   : > { %719 = vmatmul.f32.gmra.mxu2 %v681_v43 }
 0x1c9   : > { %722 = vmatmul.f32.gmra.mxu2 %v682_v44 }
 0x1d1   : > { %725 = vmatmul.f32.gmra.mxu2 %v683_v45 }
 0x1d9   : > { %728 = vmatmul.f32.gmra.mxu2 %v684_v46 }
 0x1e1   : > { %731 = vmatmul.f32.gmra.mxu2 %v685_v47 }
 0x1e9   : > { %734 = vmatmul.f32.gmra.mxu2 %v686_v48 }
 0x1f1   : > { %737 = vmatmul.f32.gmra.mxu2 %v687_v50 }
 0x1f9   : > { %740 = vmatmul.f32.gmra.mxu2 %v688_v51 }
 0x201   : > { %743 = vmatmul.f32.gmra.mxu2 %v689_v53 }
 0x209   : > { %746 = vmatmul.f32.gmra.mxu2 %v690_v54 }
 0x211   : > { %749 = vmatmul.f32.gmra.mxu2 %v691_v55 }
 0x219   : > { %752 = vmatmul.f32.gmra.mxu2 %v692_v56 }
 0x221   : > { %755 = vmatmul.f32.gmra.mxu2 %v693_v57 }
 0x22c   : > { %v711_v58 = vpop.f32.mrf.mxu2 }
 0x22d   : > { %1180 = vmatmul.msk.f32.vlgmr.msrb.gmra.mxu3 %vm426_vm0, %v711_v58 }
 0x234   : > { %v714_v59 = vpop.f32.mrf.mxu2 }
 0x235   : > { %1181 = vmatmul.msk.f32.gmra.mxu3 %vm426_vm0, %v714_v59 }
 0x23c   : > { %v717_v60 = vpop.f32.mrf.mxu2 }
 0x23d   : > { %1182 = vmatmul.msk.f32.gmra.mxu3 %vm426_vm0, %v717_v60 }
 0x244   : > { %v720_v61 = vpop.f32.mrf.mxu2 }
 0x245   : > { %1183 = vmatmul.msk.f32.gmra.mxu3 %vm426_vm0, %v720_v61 }
 0x24c   : > { %v723_v62 = vpop.f32.mrf.mxu2 }
 0x24d   : > { %1184 = vmatmul.msk.f32.gmra.mxu3 %vm426_vm0, %v723_v62 }
 0x254   : > { %v726_v63 = vpop.f32.mrf.mxu2 }
 0x255   : > { %1185 = vmatmul.msk.f32.gmra.mxu3 %vm426_vm0, %v726_v63  ;;  %v1231_v63 = vld [vmem:[%s1598_s9] ss:$0 sm:$0xff] }
 0x25c   : > { %v729_v0 = vpop.f32.mrf.mxu2 }
 0x25d   : > { %1186 = vmatmul.msk.f32.gmra.mxu3 %vm426_vm0, %v729_v0 }
 0x264   : > { %v732_v1 = vpop.f32.mrf.mxu2 }
 0x265   : > { %1187 = vmatmul.msk.f32.gmra.mxu3 %vm426_vm0, %v732_v1 }
 0x26c   : > { %v735_v2 = vpop.f32.mrf.mxu2 }
 0x26d   : > { %1188 = vmatmul.msk.f32.gmra.mxu3 %vm426_vm0, %v735_v2 }
 0x274   : > { %v738_v3 = vpop.f32.mrf.mxu2 }
 0x275   : > { %1189 = vmatmul.msk.f32.gmra.mxu3 %vm426_vm0, %v738_v3 }
 0x27c   : > { %v741_v5 = vpop.f32.mrf.mxu2 }
 0x27d   : > { %1190 = vmatmul.msk.f32.gmra.mxu3 %vm426_vm0, %v741_v5 }
 0x284   : > { %v744_v7 = vpop.f32.mrf.mxu2 }
 0x285   : > { %1191 = vmatmul.msk.f32.gmra.mxu3 %vm426_vm0, %v744_v7 }
 0x28c   : > { %v747_v10 = vpop.f32.mrf.mxu2 }
 0x28d   : > { %1192 = vmatmul.msk.f32.gmra.mxu3 %vm426_vm0, %v747_v10 }
 0x294   : > { %v750_v11 = vpop.f32.mrf.mxu2 }
 0x295   : > { %1193 = vmatmul.msk.f32.gmra.mxu3 %vm426_vm0, %v750_v11 }
 0x29c   : > { %v753_v12 = vpop.f32.mrf.mxu2 }
 0x29d   : > { %1194 = vmatmul.msk.f32.gmra.mxu3 %vm426_vm0, %v753_v12 }
 0x2a4   : > { %v756_v13 = vpop.f32.mrf.mxu2 }
 0x2a5   : > { %1195 = vmatmul.msk.f32.gmra.mxu3 %vm426_vm0, %v756_v13 }
 0x2b0   : > { %v830_v15 = vpop.f32.mrf.mxu3 }
 0x2b1   : > { %v831_v16 = vadd.f32 %v1230_v14, %v830_v15 }
 0x2b3   : > { %v878_v17 = vmax.f32 %v831_v16, 0.0 }
 0x2b5   : > { %1196 = vmatmul.msk.f32.vlgmr.msrb.gmra.mxu0 %vm564_vm1, %v878_v17 }
 0x2b8   : > { %v833_v18 = vpop.f32.mrf.mxu3 }
 0x2b9   : > { %v834_v19 = vadd.f32 %v1230_v14, %v833_v18 }
 0x2bb   : > { %v879_v20 = vmax.f32 %v834_v19, 0.0 }
 0x2bd   : > { %1197 = vmatmul.msk.f32.gmra.mxu0 %vm564_vm1, %v879_v20 }
 0x2c0   : > { %v836_v21 = vpop.f32.mrf.mxu3 }
 0x2c1   : > { %v837_v22 = vadd.f32 %v1230_v14, %v836_v21 }
 0x2c3   : > { %v880_v23 = vmax.f32 %v837_v22, 0.0 }
 0x2c5   : > { %1198 = vmatmul.msk.f32.gmra.mxu0 %vm564_vm1, %v880_v23 }
 0x2c8   : > { %v839_v24 = vpop.f32.mrf.mxu3 }
 0x2c9   : > { %v840_v25 = vadd.f32 %v1230_v14, %v839_v24 }
 0x2cb   : > { %v881_v26 = vmax.f32 %v840_v25, 0.0 }
 0x2cd   : > { %1199 = vmatmul.msk.f32.gmra.mxu0 %vm564_vm1, %v881_v26 }
 0x2d0   : > { %v842_v27 = vpop.f32.mrf.mxu3 }
 0x2d1   : > { %v843_v28 = vadd.f32 %v1230_v14, %v842_v27 }
 0x2d3   : > { %v882_v29 = vmax.f32 %v843_v28, 0.0 }
 0x2d5   : > { %1200 = vmatmul.msk.f32.gmra.mxu0 %vm564_vm1, %v882_v29 }
 0x2d8   : > { %v845_v30 = vpop.f32.mrf.mxu3 }
 0x2d9   : > { %v846_v31 = vadd.f32 %v1230_v14, %v845_v30 }
 0x2db   : > { %v883_v32 = vmax.f32 %v846_v31, 0.0 }
 0x2dd   : > { %1201 = vmatmul.msk.f32.gmra.mxu0 %vm564_vm1, %v883_v32 }
 0x2e0   : > { %v848_v33 = vpop.f32.mrf.mxu3 }
 0x2e1   : > { %v849_v34 = vadd.f32 %v1230_v14, %v848_v33 }
 0x2e3   : > { %v884_v35 = vmax.f32 %v849_v34, 0.0 }
 0x2e5   : > { %1202 = vmatmul.msk.f32.gmra.mxu0 %vm564_vm1, %v884_v35 }
 0x2e8   : > { %v851_v36 = vpop.f32.mrf.mxu3 }
 0x2e9   : > { %v852_v37 = vadd.f32 %v1230_v14, %v851_v36 }
 0x2eb   : > { %v885_v38 = vmax.f32 %v852_v37, 0.0 }
 0x2ed   : > { %1203 = vmatmul.msk.f32.gmra.mxu0 %vm564_vm1, %v885_v38 }
 0x2f0   : > { %v854_v39 = vpop.f32.mrf.mxu3 }
 0x2f1   : > { %v855_v40 = vadd.f32 %v1230_v14, %v854_v39 }
 0x2f3   : > { %v886_v41 = vmax.f32 %v855_v40, 0.0 }
 0x2f5   : > { %1204 = vmatmul.msk.f32.gmra.mxu0 %vm564_vm1, %v886_v41 }
 0x2f8   : > { %v857_v42 = vpop.f32.mrf.mxu3 }
 0x2f9   : > { %v858_v43 = vadd.f32 %v1230_v14, %v857_v42 }
 0x2fb   : > { %v887_v44 = vmax.f32 %v858_v43, 0.0 }
 0x2fd   : > { %1205 = vmatmul.msk.f32.gmra.mxu0 %vm564_vm1, %v887_v44 }
 0x300   : > { %v860_v45 = vpop.f32.mrf.mxu3 }
 0x301   : > { %v861_v46 = vadd.f32 %v1230_v14, %v860_v45 }
 0x303   : > { %v888_v47 = vmax.f32 %v861_v46, 0.0 }
 0x305   : > { %1206 = vmatmul.msk.f32.gmra.mxu0 %vm564_vm1, %v888_v47 }
 0x308   : > { %v863_v48 = vpop.f32.mrf.mxu3 }
 0x309   : > { %v864_v49 = vadd.f32 %v1230_v14, %v863_v48 }
 0x30b   : > { %v889_v50 = vmax.f32 %v864_v49, 0.0 }
 0x30d   : > { %1207 = vmatmul.msk.f32.gmra.mxu0 %vm564_vm1, %v889_v50 }
 0x310   : > { %v866_v51 = vpop.f32.mrf.mxu3 }
 0x311   : > { %v867_v52 = vadd.f32 %v1230_v14, %v866_v51 }
 0x313   : > { %v890_v53 = vmax.f32 %v867_v52, 0.0 }
 0x315   : > { %1208 = vmatmul.msk.f32.gmra.mxu0 %vm564_vm1, %v890_v53 }
 0x318   : > { %v869_v54 = vpop.f32.mrf.mxu3 }
 0x319   : > { %v870_v55 = vadd.f32 %v1230_v14, %v869_v54 }
 0x31b   : > { %v891_v56 = vmax.f32 %v870_v55, 0.0 }
 0x31d   : > { %1209 = vmatmul.msk.f32.gmra.mxu0 %vm564_vm1, %v891_v56 }
 0x320   : > { %v872_v57 = vpop.f32.mrf.mxu3 }
 0x321   : > { %v873_v58 = vadd.f32 %v1230_v14, %v872_v57 }
 0x323   : > { %v892_v59 = vmax.f32 %v873_v58, 0.0 }
 0x325   : > { %1210 = vmatmul.msk.f32.gmra.mxu0 %vm564_vm1, %v892_v59 }
 0x328   : > { %v875_v60 = vpop.f32.mrf.mxu3 }
 0x329   : > { %v876_v61 = vadd.f32 %v1230_v14, %v875_v60 }
 0x32b   : > { %v893_v62 = vmax.f32 %v876_v61, 0.0 }
 0x32d   : > { %1211 = vmatmul.msk.f32.gmra.mxu0 %vm564_vm1, %v893_v62 }
 0x332   : > { %v967_v0 = vpop.f32.mrf.mxu0 }
 0x333   : > { %v968_v1 = vadd.f32 %v1231_v63, %v967_v0 }
 0x335   : > { %1031 = vst.msk [vmem:[%s1552_s24] sm:$0xff] %vm426_vm0, %v968_v1 }
 0x33a   : > { %v970_v2 = vpop.f32.mrf.mxu0 }
 0x33b   : > { %v971_v3 = vadd.f32 %v1231_v63, %v970_v2 }
 0x33d   : > { %1032 = vst.msk [vmem:[%s1552_s24 + $0x8] sm:$0xff] %vm426_vm0, %v971_v3 }
 0x342   : > { %v973_v4 = vpop.f32.mrf.mxu0 }
 0x343   : > { %v974_v5 = vadd.f32 %v1231_v63, %v973_v4 }
 0x345   : > { %1033 = vst.msk [vmem:[%s1552_s24 + $0x10] sm:$0xff] %vm426_vm0, %v974_v5 }
 0x34a   : > { %v976_v6 = vpop.f32.mrf.mxu0 }
 0x34b   : > { %v977_v7 = vadd.f32 %v1231_v63, %v976_v6 }
 0x34d   : > { %1034 = vst.msk [vmem:[%s1552_s24 + $0x18] sm:$0xff] %vm426_vm0, %v977_v7 }
 0x352   : > { %v979_v8 = vpop.f32.mrf.mxu0 }
 0x353   : > { %v980_v9 = vadd.f32 %v1231_v63, %v979_v8 }
 0x355   : > { %1035 = vst.msk [vmem:[%s1552_s24 + $0x20] sm:$0xff] %vm426_vm0, %v980_v9 }
 0x35a   : > { %v982_v10 = vpop.f32.mrf.mxu0 }
 0x35b   : > { %v983_v11 = vadd.f32 %v1231_v63, %v982_v10 }
 0x35d   : > { %1036 = vst.msk [vmem:[%s1552_s24 + $0x28] sm:$0xff] %vm426_vm0, %v983_v11 }
 0x362   : > { %v985_v12 = vpop.f32.mrf.mxu0 }
 0x363   : > { %v986_v13 = vadd.f32 %v1231_v63, %v985_v12 }
 0x365   : > { %1037 = vst.msk [vmem:[%s1552_s24 + $0x30] sm:$0xff] %vm426_vm0, %v986_v13 }
 0x36a   : > { %v988_v14 = vpop.f32.mrf.mxu0 }
 0x36b   : > { %v989_v15 = vadd.f32 %v1231_v63, %v988_v14 }
 0x36d   : > { %1038 = vst.msk [vmem:[%s1552_s24 + $0x38] sm:$0xff] %vm426_vm0, %v989_v15 }
 0x372   : > { %v991_v16 = vpop.f32.mrf.mxu0 }
 0x373   : > { %v992_v17 = vadd.f32 %v1231_v63, %v991_v16 }
 0x375   : > { %1039 = vst.msk [vmem:[%s1552_s24 + $0x40] sm:$0xff] %vm426_vm0, %v992_v17 }
 0x37a   : > { %v994_v18 = vpop.f32.mrf.mxu0 }
 0x37b   : > { %v995_v19 = vadd.f32 %v1231_v63, %v994_v18 }
 0x37d   : > { %1040 = vst.msk [vmem:[%s1552_s24 + $0x48] sm:$0xff] %vm426_vm0, %v995_v19 }
 0x382   : > { %v997_v20 = vpop.f32.mrf.mxu0 }
 0x383   : > { %v998_v21 = vadd.f32 %v1231_v63, %v997_v20 }
 0x385   : > { %1041 = vst.msk [vmem:[%s1552_s24 + $0x50] sm:$0xff] %vm426_vm0, %v998_v21 }
 0x38a   : > { %v1000_v22 = vpop.f32.mrf.mxu0 }
 0x38b   : > { %v1001_v23 = vadd.f32 %v1231_v63, %v1000_v22 }
 0x38d   : > { %1042 = vst.msk [vmem:[%s1552_s24 + $0x58] sm:$0xff] %vm426_vm0, %v1001_v23 }
 0x392   : > { %v1003_v24 = vpop.f32.mrf.mxu0 }
 0x393   : > { %v1004_v25 = vadd.f32 %v1231_v63, %v1003_v24 }
 0x395   : > { %1043 = vst.msk [vmem:[%s1552_s24 + $0x60] sm:$0xff] %vm426_vm0, %v1004_v25 }
 0x39a   : > { %v1006_v26 = vpop.f32.mrf.mxu0 }
 0x39b   : > { %v1007_v27 = vadd.f32 %v1231_v63, %v1006_v26 }
 0x39d   : > { %1044 = vst.msk [vmem:[%s1552_s24 + $0x68] sm:$0xff] %vm426_vm0, %v1007_v27 }
 0x3a2   : > { %v1009_v28 = vpop.f32.mrf.mxu0 }
 0x3a3   : > { %v1010_v29 = vadd.f32 %v1231_v63, %v1009_v28 }
 0x3a5   : > { %1045 = vst.msk [vmem:[%s1552_s24 + $0x70] sm:$0xff] %vm426_vm0, %v1010_v29 }
 0x3aa   : > { %v1012_v30 = vpop.f32.mrf.mxu0 }
 0x3ab   : > { %v1013_v31 = vadd.f32 %v1231_v63, %v1012_v30 }
 0x3ad   : > { %1046 = vst.msk [vmem:[%s1552_s24 + $0x78] sm:$0xff] %vm426_vm0, %v1013_v31 }
 0x3ae PF: > { %s22_s17 = sadd.s32 1, %s1238_s17  }
 0x3af   : > { %p19_p4 = scmp.ge.s32.totalorder %s22_s17, 4  }
 0x3b1   :  { %21 = sbr.rel (!%p19_p4) target bundleno = 1 (0x1), region = 102 }

</bundles_post_ra>
